<compile_context>
chip_gen: v5e
topology: v5e:2x2
jax: 0.10.0
libtpu: 0.0.40
codegen_flags: <defaults>
</compile_context>

<pallas_src>
import functools

import jax
import jax.numpy as jnp
from jax import lax
from jax.experimental import pallas as pl
from jax.experimental.pallas import tpu as pltpu


def _round_up(v, m):
    return (v + m - 1) // m * m


def adapter_kernel(x_ref, wd_ref, bd_ref, wu_ref, bu_ref, o_ref, *, precision):
    # x_ref:  (TM, D) tile of flattened tokens.  The last grid block may be partial; its
    #         out-of-bounds rows are masked on store and rows never mix, so that is safe.
    # wd_ref: (D, A), bd_ref: (1, A), wu_ref: (A, D), bu_ref: (1, D) -- full arrays,
    #         resident in VMEM across the whole row grid (constant index_map, 1 buffer).
    x = x_ref[...]
    xf = x.astype(jnp.float32)

    h = jnp.dot(xf, wd_ref[...].astype(jnp.float32),
                preferred_element_type=jnp.float32, precision=precision)
    h = jnp.maximum(h + bd_ref[...].astype(jnp.float32), 0.0)      # down_project + ReLU

    y = jnp.dot(h, wu_ref[...].astype(jnp.float32),
                preferred_element_type=jnp.float32, precision=precision)
    y = y + bu_ref[...].astype(jnp.float32)                        # up_project

    o_ref[...] = (xf + y).astype(o_ref.dtype)                      # residual add


def adapter_layer(x, w_down, b_down, w_up, b_up, *, tile_rows=None,
                  precision=lax.Precision.HIGHEST):
    """x: (..., d_model). Weights stored pre-transposed: w_down (d_model, adapter_dim),
    w_up (adapter_dim, d_model). Returns same shape/dtype as x."""
    orig_shape = x.shape
    d_model = orig_shape[-1]
    adapter_dim = w_down.shape[1]
    n = 1
    for s in orig_shape[:-1]:
        n *= s

    # Metadata-only reshapes; no HBM copies are materialized in the wrapper.
    x2d = x.reshape(n, d_model)
    bd2d = b_down.reshape(1, adapter_dim)
    bu2d = b_up.reshape(1, d_model)

    itemsize = x.dtype.itemsize
    sublane = {4: 8, 2: 16, 1: 32}[itemsize]        # dtype-aware sublane granularity

    # ---- VMEM-aware row-tile sizing (conservative: fits v7x's 64 MiB per TensorCore) ----
    weight_bytes = (w_down.size * w_down.dtype.itemsize
                    + w_up.size * w_up.dtype.itemsize
                    + b_down.size * b_down.dtype.itemsize
                    + b_up.size * b_up.dtype.itemsize)
    # Per row of tile: 2 input + 2 output pipeline buffers (x.dtype) + f32 y temp + f32 h temps.
    per_row = 4 * d_model * itemsize + 4 * d_model + 8 * adapter_dim
    vmem_budget = 40 * 1024 * 1024
    max_by_vmem = max((vmem_budget - weight_bytes) // per_row, sublane)
    # Keep >= ~8 grid steps when N allows: both v7x TensorCores get work and DMAs overlap.
    max_by_steps = max(pl.cdiv(n, 8), sublane)
    if tile_rows is None:
        tile_rows = min(1024, max_by_vmem, max_by_steps, _round_up(n, sublane))
    tile_rows = max(sublane, (tile_rows // sublane) * sublane)

    grid = (pl.cdiv(n, tile_rows),)     # partial last block handled by masked load/store

    total_vmem = weight_bytes + per_row * tile_rows
    vmem_limit = min(64 * 1024 * 1024, max(32 * 1024 * 1024, int(total_vmem * 1.3)))

    kernel = functools.partial(adapter_kernel, precision=precision)

    out2d = pl.pallas_call(
        kernel,
        out_shape=jax.ShapeDtypeStruct((n, d_model), x.dtype),
        grid_spec=pltpu.PrefetchScalarGridSpec(
            num_scalar_prefetch=0,
            grid=grid,
            in_specs=[
                # x tile: pipelined (double-buffered) over the row grid axis.
                pl.BlockSpec((tile_rows, d_model), lambda i: (i, 0)),
                # Resident weights/biases: constant index_map, single-buffered.
                pl.BlockSpec((d_model, adapter_dim), lambda i: (0, 0),
                             pipeline_mode=pl.Buffered(1)),
                pl.BlockSpec((1, adapter_dim), lambda i: (0, 0),
                             pipeline_mode=pl.Buffered(1)),
                pl.BlockSpec((adapter_dim, d_model), lambda i: (0, 0),
                             pipeline_mode=pl.Buffered(1)),
                pl.BlockSpec((1, d_model), lambda i: (0, 0),
                             pipeline_mode=pl.Buffered(1)),
            ],
            out_specs=pl.BlockSpec((tile_rows, d_model), lambda i: (i, 0)),
        ),
        compiler_params=pltpu.CompilerParams(
            dimension_semantics=("parallel",),   # megacore / 2-TC sharding on v7x
            vmem_limit_bytes=vmem_limit,
        ),
    )(x2d, w_down, bd2d, w_up, bu2d)

    return out2d.reshape(orig_shape)


def reference_adapter(x, w_down, b_down, w_up, b_up):
    h = jnp.maximum(x @ w_down + b_down, 0.0)
    return x + (h @ w_up + b_up)


if __name__ == "__main__":
    # Shapes consistent with the module: batch=2, seq=8, d_model=32, adapter_dim=8
    batch, seq, d_model, adapter_dim = 2, 8, 32, 8

    key = jax.random.PRNGKey(0)
    kx, kwd, kbd, kwu, kbu = jax.random.split(key, 5)

    x = jax.random.normal(kx, (batch, seq, d_model), dtype=jnp.float32)

    # PyTorch Linear semantics: y = x @ W.T + b; weights stored pre-transposed
    # as (in_features, out_features).
    lim_d = 1.0 / (d_model ** 0.5)
    lim_u = 1.0 / (adapter_dim ** 0.5)
    w_down = jax.random.uniform(kwd, (d_model, adapter_dim), jnp.float32, -lim_d, lim_d)
    b_down = jax.random.uniform(kbd, (adapter_dim,), jnp.float32, -lim_d, lim_d)
    w_up = jax.random.uniform(kwu, (adapter_dim, d_model), jnp.float32, -lim_u, lim_u)
    b_up = jax.random.uniform(kbu, (d_model,), jnp.float32, -lim_u, lim_u)

    out = adapter_layer(x, w_down, b_down, w_up, b_up)
    out = jax.block_until_ready(out)

    ref = reference_adapter(x, w_down, b_down, w_up, b_up)
    assert out.shape == x.shape and out.dtype == x.dtype
    assert jnp.allclose(out, ref, atol=1e-5, rtol=1e-5), "mismatch vs reference"

    # Ragged token count (n=10, not a tile multiple): exercises the partial last block path.
    x_r = jax.random.normal(kx, (2, 5, d_model), dtype=jnp.float32)
    out_r = jax.block_until_ready(adapter_layer(x_r, w_down, b_down, w_up, b_up))
    ref_r = reference_adapter(x_r, w_down, b_down, w_up, b_up)
    assert jnp.allclose(out_r, ref_r, atol=1e-5, rtol=1e-5), "mismatch vs reference (ragged)"

    print("KERNEL_OK")
</pallas_src>

<mosaic_0001>
module attributes {stable_mosaic.version = 11 : i64} {
  func.func @adapter_kernel(%arg0: i32, %arg1: memref<8x32xf32, #tpu.memory_space<vmem>>, %arg2: memref<32x8xf32, #tpu.memory_space<vmem>>, %arg3: memref<1x8xf32, #tpu.memory_space<vmem>>, %arg4: memref<8x32xf32, #tpu.memory_space<vmem>>, %arg5: memref<1x32xf32, #tpu.memory_space<vmem>>, %arg6: memref<8x32xf32, #tpu.memory_space<vmem>>) attributes {dimension_semantics = [#tpu.dimension_semantics<parallel>], iteration_bounds = array<i64: 2>, scalar_prefetch = 0 : i64, scratch_operands = 0 : i64, tpu.core_type = #tpu.core_type<tc>, window_params = [{transform_indices = @transform_0, window_bounds = array<i64: 8, 32>}, {pipeline_mode = #tpu.pipeline_mode<synchronous>, transform_indices = @transform_1, window_bounds = array<i64: 32, 8>}, {pipeline_mode = #tpu.pipeline_mode<synchronous>, transform_indices = @transform_2, window_bounds = array<i64: 1, 8>}, {pipeline_mode = #tpu.pipeline_mode<synchronous>, transform_indices = @transform_3, window_bounds = array<i64: 8, 32>}, {pipeline_mode = #tpu.pipeline_mode<synchronous>, transform_indices = @transform_4, window_bounds = array<i64: 1, 32>}, {transform_indices = @transform_5, window_bounds = array<i64: 8, 32>}]} {
    %c0 = arith.constant 0 : index
    %c0_0 = arith.constant 0 : index
    %0 = vector.load %arg1[%c0, %c0_0] : memref<8x32xf32, #tpu.memory_space<vmem>>, vector<8x32xf32>
    %c0_1 = arith.constant 0 : index
    %c0_2 = arith.constant 0 : index
    %1 = vector.load %arg2[%c0_1, %c0_2] : memref<32x8xf32, #tpu.memory_space<vmem>>, vector<32x8xf32>
    %cst = arith.constant dense<0.000000e+00> : vector<8x8xf32>
    %2 = tpu.matmul %0, %1, %cst {dimension_numbers = #tpu.dot_dimension_numbers<[1], [0], [0], [1], [0, 0, 1, 1], [], []>, precision = #tpu.contract_precision<fp32>} : vector<8x32xf32>, vector<32x8xf32>, vector<8x8xf32> -> vector<8x8xf32>
    %c0_3 = arith.constant 0 : index
    %c0_4 = arith.constant 0 : index
    %3 = vector.load %arg3[%c0_3, %c0_4] : memref<1x8xf32, #tpu.memory_space<vmem>>, vector<1x8xf32>
    %4 = vector.broadcast %3 : vector<1x8xf32> to vector<8x8xf32>
    %5 = arith.addf %2, %4 : vector<8x8xf32>
    %cst_5 = arith.constant 0.000000e+00 : f32
    %6 = vector.broadcast %cst_5 : f32 to vector<8x8xf32>
    %7 = arith.maximumf %5, %6 : vector<8x8xf32>
    %c0_6 = arith.constant 0 : index
    %c0_7 = arith.constant 0 : index
    %8 = vector.load %arg4[%c0_6, %c0_7] : memref<8x32xf32, #tpu.memory_space<vmem>>, vector<8x32xf32>
    %cst_8 = arith.constant dense<0.000000e+00> : vector<8x32xf32>
    %9 = tpu.matmul %7, %8, %cst_8 {dimension_numbers = #tpu.dot_dimension_numbers<[1], [0], [0], [1], [0, 0, 1, 1], [], []>, precision = #tpu.contract_precision<fp32>} : vector<8x8xf32>, vector<8x32xf32>, vector<8x32xf32> -> vector<8x32xf32>
    %c0_9 = arith.constant 0 : index
    %c0_10 = arith.constant 0 : index
    %10 = vector.load %arg5[%c0_9, %c0_10] : memref<1x32xf32, #tpu.memory_space<vmem>>, vector<1x32xf32>
    %11 = vector.broadcast %10 : vector<1x32xf32> to vector<8x32xf32>
    %12 = arith.addf %9, %11 : vector<8x32xf32>
    %13 = arith.addf %0, %12 : vector<8x32xf32>
    %c0_11 = arith.constant 0 : index
    %c0_12 = arith.constant 0 : index
    %14 = vector.load %arg6[%c0_11, %c0_12] : memref<8x32xf32, #tpu.memory_space<vmem>>, vector<8x32xf32>
    tpu.vector_store %arg6[%c0_11, %c0_12], %13 {strides = array<i32>} : memref<8x32xf32, #tpu.memory_space<vmem>>, vector<8x32xf32>,
    return
  }
  func.func @transform_0(%arg0: i32) -> (i32, i32) {
    %c0_i32 = arith.constant 0 : i32
    %c0_i32_0 = arith.constant 0 : i32
    return %arg0, %c0_i32 : i32, i32
  }
  func.func @transform_1(%arg0: i32) -> (i32, i32) {
    %c0_i32 = arith.constant 0 : i32
    %c0_i32_0 = arith.constant 0 : i32
    %c0_i32_1 = arith.constant 0 : i32
    return %c0_i32, %c0_i32_0 : i32, i32
  }
  func.func @transform_2(%arg0: i32) -> (i32, i32) {
    %c0_i32 = arith.constant 0 : i32
    %c0_i32_0 = arith.constant 0 : i32
    %c0_i32_1 = arith.constant 0 : i32
    return %c0_i32, %c0_i32_0 : i32, i32
  }
  func.func @transform_3(%arg0: i32) -> (i32, i32) {
    %c0_i32 = arith.constant 0 : i32
    %c0_i32_0 = arith.constant 0 : i32
    %c0_i32_1 = arith.constant 0 : i32
    return %c0_i32, %c0_i32_0 : i32, i32
  }
  func.func @transform_4(%arg0: i32) -> (i32, i32) {
    %c0_i32 = arith.constant 0 : i32
    %c0_i32_0 = arith.constant 0 : i32
    %c0_i32_1 = arith.constant 0 : i32
    return %c0_i32, %c0_i32_0 : i32, i32
  }
  func.func @transform_5(%arg0: i32) -> (i32, i32) {
    %c0_i32 = arith.constant 0 : i32
    %c0_i32_0 = arith.constant 0 : i32
    return %arg0, %c0_i32 : i32, i32
  }
}

</mosaic_0001>

<bundles_post_ra>
// kernel: tpu_custom_call.1
= control target key start
LH: loop header
LB: loop body
LE: loop exit
PB: predicated region body
PF: predicated region fallthrough
CT: control target
= control target key end

     0   :  { %10 = vsyncpa [#allocation3], 0  ;;  %s908_s0 = inlined_call_operand.vmem [shape: f32[16,32], index: 0, kind: input, shape index: {}]   ;;  %s909_s1 = inlined_call_operand.vmem [shape: f32[32,8], index: 1, kind: input, shape index: {}]   ;;  %s910_s2 = inlined_call_operand.vmem [shape: f32[1,8], index: 2, kind: input, shape index: {}]   ;;  %s911_s3 = inlined_call_operand.vmem [shape: f32[8,32], index: 3, kind: input, shape index: {}]   ;;  %s912_s4 = inlined_call_operand.vmem [shape: f32[1,32], index: 4, kind: input, shape index: {}]   ;;  %s913_s5 = inlined_call_operand.hbm [shape: f32[16,32], index: 5, kind: output, shape index: {}]  }
   0x1   :  { %12 = vsyncpa [#allocation3 + $0x1], 0  ;;  %s796_s18 = smov 0   ;;  %s798_s19 = smov 0  }
   0x2   :  { %s800_s20 = smov 0   ;;  %s802_s21 = smov 0  }
   0x3 LB: > { %s817_s22 = sadd.s32 4294967295, %s764_s21   ;;  %s651_s23 = sadd.s32 4294967294, %s764_s21   ;;  %s764_s21 = sphi %s802_s21, %s919_s21   ;;  %s760_s20 = sphi %s800_s20, %s918_s20   ;;  %s756_s19 = sphi %s798_s19, %s917_s19   ;;  %s752_s18 = sphi %s796_s18, %s916_s18  }
   0x4   : > { %s821_s24 = sadd.s32 1, %s764_s21   ;;  %s135_s25 = sadd.s32 1, %s760_s20 }
   0x5   : > { %s132_s26 = ssub.s32 %s764_s21, %s821_s24  ;;  %p145_p0 = scmp.ne.s32.totalorder %s760_s20, %s756_s19 }
   0x6   : > { %p133_p1 = scmp.eq.s32.totalorder %s132_s26, 0  ;;  %p146_p2 = scmp.eq.s32.totalorder %s817_s22, 1 }
   0x7   : > { %p151_p3 = scmp.ne.s32.totalorder %s756_s19, %s752_s18  ;;  %p152_p4 = scmp.eq.s32.totalorder %s651_s23, 1 }
   0x8   : > { %s832_s27 = scalar_select %p133_p1, %s760_s20, %s135_s25  }
   0x9   : > { %p834_p5 = por %p146_p2, %p145_p0  ;;  %p838_p6 = por %p152_p4, %p151_p3 }
   0xa   : > { %p654_p7 = scmp.ge.s32.totalorder %s764_s21, 1  ;;  %p189_p8 = scmp.lt.s32.totalorder %s764_s21, 3 }
   0xc   : > { %p190_p9 = pnand %p654_p7, %p189_p8 }
   0xd   : > { %p216_p10 = scmp.lt.s32.totalorder (!%p190_p9), %s817_s22, 1  ;;  %s213_s8 = sand.u32 (!%p190_p9), 1, %s756_s19  }
   0xe   : > { %193 = sbr.rel (%p190_p9) target bundleno = 336 (0x150), region = 40  ;;  %s655_s9 = sshll.u32 (!%p190_p9), %s213_s8, 3 }
   0xf   : > { %s658_s10 = sshll.u32 (!%p190_p9), %s817_s22, 3  ;;  %s722_s30 = scalar_lea.hbm (!%p190_p9), %s913_s5, 16 }
  0x13   : > { %v224_v0 = vld [vmem:[%s909_s1 + $0x18] sm:$0xff]  ;;  %v223_v1 = vld [vmem:[%s909_s1 + $0x10] sm:$0xff]  ;;  %v222_v2 = vld [vmem:[%s909_s1 + $0x8] sm:$0xff]  ;;  %s217_s13 = scalar_select %p216_p10, %s817_s22, 1  ;;  %vm229_vm0 = vcmask 261120   ;;  %vm424_vm1 = vcmask 64512  }
  0x14   : > { %v245_v3 = vand.u32 4294901760, %v224_v0  ;;  %v247_v4 = vand.u32 4294901760, %v223_v1  ;;  %v249_v5 = vand.u32 4294901760, %v222_v2  ;;  %v221_v6 = vld [vmem:[%s909_s1] sm:$0xff]  ;;  %s577_s22 = scalar_lea.sflag [#allocation3], %s213_s8 }
  0x15   : > { %v251_v7 = vand.u32 4294901760, %v221_v6  ;;  %s656_s14 = sshll.u32 %s217_s13, 3  ;;  %v419_v31 = vld [vmem:[%s911_s3] sm:$0xff]  ;;  %s587_s13 = scalar_lea.hbm %s913_s5, %s658_s10 }
  0x16   : > { %v275_v8 = vsub.f32 %v224_v0, %v245_v3  ;;  %246 = vmatpush.msra.mxu0 %v245_v3  ;;  %v281_v9 = vsub.f32 %v223_v1, %v247_v4  ;;  %346 = vmatpush.msra.mxu3 %v245_v3  ;;  %v287_v10 = vsub.f32 %v222_v2, %v249_v5  ;;  %s219_s17 = scalar_lea.vmem %s908_s0, %s656_s14  ;;  %v443_v32 = vand.u32 4294901760, %v419_v31  ;;  %v700_v37 = vld [vmem:[%s910_s2] ss:$0 sm:$0xff]  ;;  %s215_s14 = scalar_lea.vmem [#allocation2], %s655_s9 }
  0x17   : > { %v293_v11 = vsub.f32 %v221_v6, %v251_v7  ;;  %v861_v15 = vld [vmem:[%s219_s17] sm:$0xff]  ;;  %s589_s15 = sshll.u32 %s215_s14, 4  ;;  %s591_s16 = sshll.u32 %s587_s13, 4  ;;  %s590_s15 = int_to_ptr.vmem [resolvable:$true] %s589_s15  ;;  %s592_s16 = int_to_ptr.hbm [resolvable:$true] %s591_s16 }
  0x18   : > { %317 = vmatpush.msra.mxu2 %v275_v8  ;;  %248 = vmatpush.msra.mxu0 %v247_v4  ;;  %v276_v12 = vand.u32 4294901760, %v275_v8  ;;  %v282_v13 = vand.u32 4294901760, %v281_v9  ;;  %v288_v14 = vand.u32 4294901760, %v287_v10  ;;  %v231_v19 = vsel %vm229_vm0, %v861_v15, 0  ;;  %v701_v57 = vld [vmem:[%s912_s4] ss:$0 sm:$0xff] }
  0x19   : > { %348 = vmatpush.msra.mxu3 %v247_v4  ;;  %v294_v16 = vand.u32 4294901760, %v293_v11  ;;  %v253_v21 = vand.u32 4294901760, %v231_v19  ;;  %v470_v33 = vsub.f32 %v419_v31, %v443_v32  ;;  %s716_s17 = sshra.s32 %s592_s16, 4  ;;  %s717_s17 = int_to_ptr.hbm [resolvable:$true] %s716_s17 }
  0x1a   : > { %320 = vmatpush.msra.mxu2 %v281_v9  ;;  %v277_v17 = vsub.f32 %v275_v8, %v276_v12  ;;  %250 = vmatpush.msra.mxu0 %v249_v5  ;;  %v283_v18 = vsub.f32 %v281_v9, %v282_v13  ;;  %v289_v20 = vsub.f32 %v287_v10, %v288_v14  ;;  %s718_s23 = scalar_lea.hbm %s717_s17, 8  ;;  %p723_p0 = scmp.lt.s32.totalorder %s717_s17, %s913_s5 }
  0x1b   : > { %350 = vmatpush.msra.mxu3 %v249_v5  ;;  %v295_v24 = vsub.f32 %v293_v11, %v294_v16  ;;  %v254_v25 = vsub.f32 %v231_v19, %v253_v21  ;;  %v471_v34 = vand.u32 4294901760, %v470_v33  ;;  %p719_p11 = scmp.ne.s32.totalorder %s717_s17, %s718_s23  ;;  %p724_p1 = scmp.lt.s32.totalorder %s722_s30, %s718_s23 }
  0x1c   : > { %v278_v22 = vand.u32 4294901760, %v277_v17  ;;  %323 = vmatpush.msra.mxu2 %v287_v10  ;;  %v284_v23 = vand.u32 4294901760, %v283_v18  ;;  %252 = vmatpush.msra.mxu0 %v251_v7  ;;  %v290_v26 = vand.u32 4294901760, %v289_v20 }
  0x1d   : > { %352 = vmatpush.msra.mxu3 %v251_v7  ;;  %v255_v27 = vand.u32 4294901760, %v254_v25  ;;  %v296_v28 = vand.u32 4294901760, %v295_v24  ;;  %v472_v35 = vsub.f32 %v470_v33, %v471_v34  ;;  %p720_p12 = pnand %p719_p11, %p834_p5  ;;  %p725_p2 = por %p724_p1, %p723_p0 }
  0x1e   : > { %375 = vmatpush.msrb.mxu0 %v276_v12  ;;  %279 = vmatpush.msra.mxu1 %v278_v22 }
  0x1f   : > { %326 = vmatpush.msra.mxu2 %v293_v11  ;;  %v256_v29 = vsub.f32 %v254_v25, %v255_v27  ;;  %356 = vmatmul.f32.vlgmr.msra.gmra.mxu3 %v255_v27  ;;  %v473_v36 = vand.u32 4294901760, %v472_v35  ;;  %p721_p13 = pneg %p720_p12 }
  0x20   : > { %329 = vmatmul.f32.vlgmr.msra.gmra.mxu2 %v254_v25  ;;  %379 = vmatpush.msrb.mxu0 %v282_v13 }
  0x21   : > { %285 = vmatpush.msra.mxu1 %v284_v23  ;;  %v257_v30 = vand.u32 4294901760, %v256_v29  ;;  %444 = vmatpush.msrb.mxu2 %v443_v32  ;;  %p726_p3 = pnand %p725_p2, %p721_p13 }
  0x22   : > { %383 = vmatpush.msrb.mxu0 %v288_v14  ;;  %474 = vmatpush.msrb.mxu3 %v473_v36 }
  0x23   : > { %291 = vmatpush.msra.mxu1 %v290_v26  ;;  %258 = vmatmul.f32.vlgmr.msra.gmra.mxu0 %v257_v30 }
  0x24   : > { %387 = vmatpush.msrb.mxu0 %v294_v16  ;;  %546 = vmatpush.msra.mxu2 %v471_v34 }
  0x25   : > { %297 = vmatpush.msra.mxu1 %v296_v28  ;;  %568 = vmatpush.msra.mxu3 %v443_v32 }
  0x26   : > { %299 = vmatmul.f32.vlgmr.msra.gmra.mxu1 %v253_v21  ;;  %497 = vmatpush.msra.mxu0 %v470_v33 }
  0x27   : > { %406 = vmatpush.msrb.mxu1 %v245_v3 }
  0x29   : > { %408 = vmatpush.msrb.mxu1 %v247_v4 }
  0x2b   : > { %410 = vmatpush.msrb.mxu1 %v249_v5  ;;  %389 = vmatmul.f32.vlgmr.msrb.gmra.mxu0 %v253_v21 }
  0x2d   : > { %412 = vmatpush.msrb.mxu1 %v251_v7 }
  0x2e   : > { %414 = vmatmul.f32.vlgmr.msrb.gmra.mxu1 %v253_v21 }
  0x2f   : > { %520 = vmatpush.msra.mxu1 %v443_v32 }
  0xa0   : > { %v259_v38 = vpop.f32.mrf.mxu0 }
  0xa1   : > { %v260_v40 = vadd.f32 %v700_v37, %v259_v38 }
  0xa2   : > { %v357_v43 = vpop.f32.mrf.mxu3 }
  0xa3   : > { %v300_v39 = vpop.f32.mrf.mxu1  ;;  %v330_v41 = vpop.f32.mrf.mxu2 }
  0xa4   : > { %v301_v42 = vadd.f32 %v300_v39, %v260_v40 }
  0xa6   : > { %v331_v44 = vadd.f32 %v330_v41, %v301_v42 }
  0xa8   : > { %v358_v45 = vadd.f32 %v357_v43, %v331_v44  ;;  %v390_v46 = vpop.f32.mrf.mxu0 }
  0xaa   : > { %v391_v48 = vadd.f32 %v390_v46, %v358_v45 }
  0xab   : > { %v415_v47 = vpop.f32.mrf.mxu1 }
  0xac   : > { %v416_v49 = vadd.f32 %v415_v47, %v391_v48 }
  0xae   : > { %v418_v50 = vmax.f32 %v416_v49, 0.0 }
  0xb0   : > { %v426_v51 = vsel %vm424_vm1, %v418_v50, 0 }
  0xb1   : > { %v445_v52 = vand.u32 4294901760, %v426_v51 }
  0xb3   : > { %v446_v53 = vsub.f32 %v426_v51, %v445_v52  ;;  %476 = vmatmul.f32.vlgmr.msrb.gmra.mxu3 %v445_v52 }
  0xb5   : > { %500 = vmatmul.f32.vlgmr.msra.gmra.mxu0 %v446_v53  ;;  %v447_v54 = vand.u32 4294901760, %v446_v53 }
  0xb7   : > { %524 = vmatmul.f32.vlgmr.msra.gmra.mxu1 %v447_v54  ;;  %v448_v55 = vsub.f32 %v446_v53, %v447_v54 }
  0xb9   : > { %v449_v56 = vand.u32 4294901760, %v448_v55 }
  0xbb   : > { %450 = vmatmul.f32.vlgmr.msrb.gmra.mxu2 %v449_v56  ;;  %570 = vmatmul.f32.vlgmr.msra.gmra.mxu3 %v445_v52 }
  0xc3   : > { %548 = vmatmul.f32.vlgmr.msra.gmra.mxu2 %v445_v52 }
 0x132   : > { %v501_v62 = vpop.f32.mrf.mxu0 }
 0x134   : > { %v525_v0 = vpop.f32.mrf.mxu1 }
 0x136   : > { %v477_v58 = vpop.f32.mrf.mxu3 }
 0x13e   : > { %v451_v59 = vpop.f32.mrf.mxu2  ;;  %v571_v4 = vpop.f32.mrf.mxu3 }
 0x13f   : > { %v452_v60 = vadd.f32 %v701_v57, %v451_v59 }
 0x141   : > { %v478_v61 = vadd.f32 %v477_v58, %v452_v60 }
 0x143   : > { %v502_v63 = vadd.f32 %v501_v62, %v478_v61 }
 0x145   : > { %v526_v1 = vadd.f32 %v525_v0, %v502_v63 }
 0x146   : > { %v549_v2 = vpop.f32.mrf.mxu2 }
 0x147   : > { %v550_v3 = vadd.f32 %v549_v2, %v526_v1 }
 0x149   : > { %v572_v5 = vadd.f32 %v571_v4, %v550_v3 }
 0x14b   : > { %v574_v6 = vadd.f32 %v572_v5, %v861_v15 }
 0x14d   : > { %575 = vst.msk [vmem:[%s215_s14] sm:$0xff] %vm229_vm0, %v574_v6 }
 0x14e   : > { %729 = shalt.err (!%p726_p3)
}
 0x14f   : > { %661 = dma.vmem_to_hbm [thread:$0]  (%p834_p5), %s590_s15, 128, %s592_s16, %s577_s22  }
 0x150 PF: > { %p667_p4 = scmp.ge.s32.totalorder %s764_s21, 2  ;;  %s603_s8 = sand.u32 1, %s752_s18  }
 0x151   : > { %s604_s9 = scalar_lea.sflag [#allocation3], %s603_s8 }
 0x152   : > { %p664_p7 = pnand %p667_p4, %p838_p6 }
 0x154   : > { %p665_p8 = pneg %p664_p7 }
 0x156   : > { %747 = dma.done.wait (%p665_p8), %s604_s9, 128  }
 0x157   : > { %749 = vsyncadd (%p665_p8), %s604_s9, 4294967168  ;;  %p15_p9 = scmp.ge.s32.totalorder %s821_s24, 4   ;;  %s916_s18 = smov %s756_s19 }
 0x158   : > { %s917_s19 = smov %s760_s20  ;;  %s918_s20 = smov %s832_s27 }
 0x159   : > { %s919_s21 = smov %s821_s24  ;;  %17 = sbr.rel (!%p15_p9) target bundleno = 3 (0x3), region = 75 }
 0x15e   :  { %610 = vsyncpa [#allocation3], 1 }
 0x15f   :  { %612 = vsyncpa [#allocation3 + $0x1], 1 }

</bundles_post_ra>
